<compile_context>
chip_gen: v5e
topology: v5e:2x2
jax: 0.10.0
libtpu: 0.0.40
codegen_flags: <defaults>
</compile_context>

<pallas_src>
import jax
import jax.numpy as jnp
from jax.experimental import pallas as pl
from jax.experimental.pallas import tpu as pltpu


def _round_up(v, m):
    return ((v + m - 1) // m) * m


def _mlp_kernel(x_ref, w1_ref, b1_ref, w2_ref, b2_ref, w3_ref, b3_ref, o_ref):
    # x_ref : (1, BB)       batch on lanes
    # w1_ref: (H, 1)        PyTorch dense1.weight (out, in) with in == 1
    # b1_ref: (H, 1)
    # w2_ref: (H, H)        PyTorch dense2.weight (out, in)
    # b2_ref: (H, 1)
    # w3_ref: (1, H)        PyTorch out.weight (out, in) with out == 1
    # b3_ref: (1, 1) SMEM   scalar bias
    # o_ref : (1, BB)       lane-dense output block

    # dense1 + ReLU : K == 1 -> pure broadcast multiply on the VPU (MXU would be wasted).
    h = jnp.maximum(w1_ref[...] * x_ref[...] + b1_ref[...], 0.0)           # (H, BB)

    # dense2 + ReLU : (H, H) @ (H, BB) on the MXU, f32 accumulation.
    h = jnp.dot(w2_ref[...], h, preferred_element_type=jnp.float32)        # (H, BB)
    h = jnp.maximum(h + b2_ref[...], 0.0)

    # out : (1, H) @ (H, BB) on the MXU (keeps the multiply+reduce off the VPU/XLU).
    y = jnp.dot(w3_ref[...], h, preferred_element_type=jnp.float32)        # (1, BB)
    o_ref[...] = (y + b3_ref[0, 0]).astype(o_ref.dtype)


def _mlp_forward(x, params_torch, *, block_b=2048):
    """x: (N, n_input) with n_input == 1; params in PyTorch nn.Linear layout."""
    (W1, B1), (W2, B2), (W3, B3) = params_torch
    n, n_input = x.shape
    assert n_input == 1, "Net spec has n_input == 1"
    n_hidden = W2.shape[0]
    n_output = W3.shape[0]

    # Lane block: at least 128, at most block_b, and batch padded to a multiple of it.
    bb = _round_up(min(block_b, _round_up(n, 128)), 128)
    b_pad = _round_up(n, bb)
    grid = (b_pad // bb,)

    # Batch on lanes, zero-padded -> full unmasked vregs / lane-dense stores.
    xt = jnp.pad(x.astype(jnp.float32).T, ((0, 0), (0, b_pad - n)))        # (1, b_pad)

    # Kernel-layout parameters (features on sublanes, biases broadcast along lanes).
    w1 = W1.reshape(n_hidden, n_input).astype(jnp.float32)                 # (H, 1)
    b1 = B1.reshape(n_hidden, 1).astype(jnp.float32)                       # (H, 1)
    w2 = W2.astype(jnp.float32)                                            # (H, H)
    b2 = B2.reshape(n_hidden, 1).astype(jnp.float32)                       # (H, 1)
    w3 = W3.reshape(n_output, n_hidden).astype(jnp.float32)                # (1, H)
    b3 = B3.reshape(n_output, 1).astype(jnp.float32)                       # (1, 1) -> SMEM

    const2 = lambda i: (0, 0)  # weights: block index never changes -> fetched once
    out_t = pl.pallas_call(
        _mlp_kernel,
        out_shape=jax.ShapeDtypeStruct((n_output, b_pad), jnp.float32),
        grid=grid,
        in_specs=[
            pl.BlockSpec((n_input, bb), lambda i: (0, i)),                 # x: lane-blocked
            pl.BlockSpec((n_hidden, 1), const2),                           # w1 (VMEM-resident)
            pl.BlockSpec((n_hidden, 1), const2),                           # b1
            pl.BlockSpec((n_hidden, n_hidden), const2),                    # w2
            pl.BlockSpec((n_hidden, 1), const2),                           # b2
            pl.BlockSpec((n_output, n_hidden), const2),                    # w3
            pl.BlockSpec((1, 1), const2,
                         memory_space=pltpu.MemorySpace.SMEM),             # b3 scalar
        ],
        out_specs=pl.BlockSpec((n_output, bb), lambda i: (0, i)),
        compiler_params=pltpu.CompilerParams(
            dimension_semantics=("parallel",)),                            # split blocks across TCs (v7x)
    )(xt, w1, b1, w2, b2, w3, b3)

    # Back to the PyTorch-facing (batch, n_output) layout; slice off padding.
    return out_t[:, :n].T


# jit so the pad / transposes / final slice fuse with the Pallas custom call.
mlp_forward = jax.jit(_mlp_forward, static_argnames=("block_b",))


def init_params(key, n_input, n_hidden, n_output):
    """PyTorch nn.Linear default init (U[-1/sqrt(fan_in), +]); weights stored (out, in)."""
    ks = jax.random.split(key, 6)

    def lin(kw, kb, fan_in, fan_out):
        bound = 1.0 / jnp.sqrt(jnp.float32(fan_in))
        w = jax.random.uniform(kw, (fan_out, fan_in), jnp.float32, -bound, bound)
        b = jax.random.uniform(kb, (fan_out,), jnp.float32, -bound, bound)
        return w, b

    return (
        lin(ks[0], ks[1], n_input, n_hidden),   # dense1
        lin(ks[2], ks[3], n_hidden, n_hidden),  # dense2
        lin(ks[4], ks[5], n_hidden, n_output),  # out
    )


def ref_forward(x, params_torch):
    (W1, B1), (W2, B2), (W3, B3) = params_torch
    h = jnp.maximum(x @ W1.T + B1, 0.0)
    h = jnp.maximum(h @ W2.T + B2, 0.0)
    return h @ W3.T + B3


if __name__ == "__main__":
    key = jax.random.PRNGKey(0)
    n_input, n_hidden, n_output = 1, 32, 1
    params = init_params(key, n_input, n_hidden, n_output)

    # Original spec: x = torch.unsqueeze(torch.linspace(-1, 1, 100), dim=1)
    batch = 100
    x = jnp.linspace(-1.0, 1.0, batch, dtype=jnp.float32).reshape(batch, 1)
    out = jax.block_until_ready(mlp_forward(x, params))
    ref = ref_forward(x, params)
    assert out.shape == (batch, n_output)
    assert jnp.allclose(out, ref, atol=1e-4, rtol=1e-4)

    # Exercise the multi-block grid path (grid > 1) as well.
    batch2 = 4096 + 37
    x2 = jnp.linspace(-1.0, 1.0, batch2, dtype=jnp.float32).reshape(batch2, 1)
    out2 = jax.block_until_ready(mlp_forward(x2, params))
    ref2 = ref_forward(x2, params)
    assert out2.shape == (batch2, n_output)
    assert jnp.allclose(out2, ref2, atol=1e-4, rtol=1e-4)

    print("KERNEL_OK")
</pallas_src>

<mosaic_0001>
module attributes {stable_mosaic.version = 11 : i64} {
  func.func @_mlp_kernel(%arg0: i32, %arg1: memref<1x128xf32, #tpu.memory_space<vmem>>, %arg2: memref<32x1xf32, #tpu.memory_space<vmem>>, %arg3: memref<32x1xf32, #tpu.memory_space<vmem>>, %arg4: memref<32x32xf32, #tpu.memory_space<vmem>>, %arg5: memref<32x1xf32, #tpu.memory_space<vmem>>, %arg6: memref<1x32xf32, #tpu.memory_space<vmem>>, %arg7: memref<1x1xf32, #tpu.memory_space<smem>>, %arg8: memref<1x128xf32, #tpu.memory_space<vmem>>) attributes {dimension_semantics = [#tpu.dimension_semantics<parallel>], iteration_bounds = array<i64: 1>, scalar_prefetch = 0 : i64, scratch_operands = 0 : i64, tpu.core_type = #tpu.core_type<tc>, window_params = [{transform_indices = @transform_0, window_bounds = array<i64: 1, 128>}, {pipeline_mode = #tpu.pipeline_mode<synchronous>, transform_indices = @transform_1, window_bounds = array<i64: 32, 1>}, {pipeline_mode = #tpu.pipeline_mode<synchronous>, transform_indices = @transform_2, window_bounds = array<i64: 32, 1>}, {pipeline_mode = #tpu.pipeline_mode<synchronous>, transform_indices = @transform_3, window_bounds = array<i64: 32, 32>}, {pipeline_mode = #tpu.pipeline_mode<synchronous>, transform_indices = @transform_4, window_bounds = array<i64: 32, 1>}, {pipeline_mode = #tpu.pipeline_mode<synchronous>, transform_indices = @transform_5, window_bounds = array<i64: 1, 32>}, {transform_indices = @transform_6, window_bounds = array<i64: 1, 1>}, {transform_indices = @transform_7, window_bounds = array<i64: 1, 128>}]} {
    %c0 = arith.constant 0 : index
    %c0_0 = arith.constant 0 : index
    %0 = vector.load %arg2[%c0, %c0_0] : memref<32x1xf32, #tpu.memory_space<vmem>>, vector<32x1xf32>
    %c0_1 = arith.constant 0 : index
    %c0_2 = arith.constant 0 : index
    %1 = vector.load %arg1[%c0_1, %c0_2] : memref<1x128xf32, #tpu.memory_space<vmem>>, vector<1x128xf32>
    %2 = vector.broadcast %0 : vector<32x1xf32> to vector<32x128xf32>
    %3 = vector.broadcast %1 : vector<1x128xf32> to vector<32x128xf32>
    %4 = arith.mulf %2, %3 : vector<32x128xf32>
    %c0_3 = arith.constant 0 : index
    %c0_4 = arith.constant 0 : index
    %5 = vector.load %arg3[%c0_3, %c0_4] : memref<32x1xf32, #tpu.memory_space<vmem>>, vector<32x1xf32>
    %6 = vector.broadcast %5 : vector<32x1xf32> to vector<32x128xf32>
    %7 = arith.addf %4, %6 : vector<32x128xf32>
    %cst = arith.constant 0.000000e+00 : f32
    %8 = vector.broadcast %cst : f32 to vector<32x128xf32>
    %9 = arith.maximumf %7, %8 : vector<32x128xf32>
    %c0_5 = arith.constant 0 : index
    %c0_6 = arith.constant 0 : index
    %10 = vector.load %arg4[%c0_5, %c0_6] : memref<32x32xf32, #tpu.memory_space<vmem>>, vector<32x32xf32>
    %cst_7 = arith.constant dense<0.000000e+00> : vector<32x128xf32>
    %11 = tpu.matmul %10, %9, %cst_7 {dimension_numbers = #tpu.dot_dimension_numbers<[1], [0], [0], [1], [0, 0, 1, 1], [], []>} : vector<32x32xf32>, vector<32x128xf32>, vector<32x128xf32> -> vector<32x128xf32>
    %c0_8 = arith.constant 0 : index
    %c0_9 = arith.constant 0 : index
    %12 = vector.load %arg5[%c0_8, %c0_9] : memref<32x1xf32, #tpu.memory_space<vmem>>, vector<32x1xf32>
    %13 = vector.broadcast %12 : vector<32x1xf32> to vector<32x128xf32>
    %14 = arith.addf %11, %13 : vector<32x128xf32>
    %cst_10 = arith.constant 0.000000e+00 : f32
    %15 = vector.broadcast %cst_10 : f32 to vector<32x128xf32>
    %16 = arith.maximumf %14, %15 : vector<32x128xf32>
    %c0_11 = arith.constant 0 : index
    %c0_12 = arith.constant 0 : index
    %17 = vector.load %arg6[%c0_11, %c0_12] : memref<1x32xf32, #tpu.memory_space<vmem>>, vector<1x32xf32>
    %cst_13 = arith.constant dense<0.000000e+00> : vector<1x128xf32>
    %18 = tpu.matmul %17, %16, %cst_13 {dimension_numbers = #tpu.dot_dimension_numbers<[1], [0], [0], [1], [0, 0, 1, 1], [], []>} : vector<1x32xf32>, vector<32x128xf32>, vector<1x128xf32> -> vector<1x128xf32>
    %c0_14 = arith.constant 0 : index
    %c0_15 = arith.constant 0 : index
    %19 = memref.load %arg7[%c0_14, %c0_15] : memref<1x1xf32, #tpu.memory_space<smem>>
    %20 = vector.broadcast %19 : f32 to vector<1x128xf32>
    %21 = arith.addf %18, %20 : vector<1x128xf32>
    %c0_16 = arith.constant 0 : index
    %c0_17 = arith.constant 0 : index
    %22 = vector.load %arg8[%c0_16, %c0_17] : memref<1x128xf32, #tpu.memory_space<vmem>>, vector<1x128xf32>
    tpu.vector_store %arg8[%c0_16, %c0_17], %21 {strides = array<i32>} : memref<1x128xf32, #tpu.memory_space<vmem>>, vector<1x128xf32>,
    return
  }
  func.func @transform_0(%arg0: i32) -> (i32, i32) {
    %c0_i32 = arith.constant 0 : i32
    %c0_i32_0 = arith.constant 0 : i32
    return %c0_i32, %arg0 : i32, i32
  }
  func.func @transform_1(%arg0: i32) -> (i32, i32) {
    %c0_i32 = arith.constant 0 : i32
    %c0_i32_0 = arith.constant 0 : i32
    %c0_i32_1 = arith.constant 0 : i32
    return %c0_i32, %c0_i32_0 : i32, i32
  }
  func.func @transform_2(%arg0: i32) -> (i32, i32) {
    %c0_i32 = arith.constant 0 : i32
    %c0_i32_0 = arith.constant 0 : i32
    %c0_i32_1 = arith.constant 0 : i32
    return %c0_i32, %c0_i32_0 : i32, i32
  }
  func.func @transform_3(%arg0: i32) -> (i32, i32) {
    %c0_i32 = arith.constant 0 : i32
    %c0_i32_0 = arith.constant 0 : i32
    %c0_i32_1 = arith.constant 0 : i32
    return %c0_i32, %c0_i32_0 : i32, i32
  }
  func.func @transform_4(%arg0: i32) -> (i32, i32) {
    %c0_i32 = arith.constant 0 : i32
    %c0_i32_0 = arith.constant 0 : i32
    %c0_i32_1 = arith.constant 0 : i32
    return %c0_i32, %c0_i32_0 : i32, i32
  }
  func.func @transform_5(%arg0: i32) -> (i32, i32) {
    %c0_i32 = arith.constant 0 : i32
    %c0_i32_0 = arith.constant 0 : i32
    %c0_i32_1 = arith.constant 0 : i32
    return %c0_i32, %c0_i32_0 : i32, i32
  }
  func.func @transform_6(%arg0: i32) -> (i32, i32) {
    %c0_i32 = arith.constant 0 : i32
    %c0_i32_0 = arith.constant 0 : i32
    %c0_i32_1 = arith.constant 0 : i32
    return %c0_i32, %c0_i32_0 : i32, i32
  }
  func.func @transform_7(%arg0: i32) -> (i32, i32) {
    %c0_i32 = arith.constant 0 : i32
    %c0_i32_0 = arith.constant 0 : i32
    return %c0_i32, %arg0 : i32, i32
  }
}

</mosaic_0001>

<bundles_post_ra>
// kernel: _mlp_forward.1
= control target key start
LH: loop header
LB: loop body
LE: loop exit
PB: predicated region body
PF: predicated region fallthrough
CT: control target
= control target key end

     0   :  { %v214_v0 = vmov 0   ;;  %vm119_vm0 = vcmask 261120   ;;  %s320_s2 = inlined_call_operand.vmem [shape: f32[32,1], index: 2, kind: input, shape index: {}]   ;;  %s321_s1 = inlined_call_operand.vmem [shape: f32[32,1], index: 1, kind: input, shape index: {}]   ;;  %s322_s0 = inlined_call_operand.vmem [shape: f32[1,128], index: 0, kind: input, shape index: {}]   ;;  %s323_s4 = inlined_call_operand.vmem [shape: f32[32,1], index: 4, kind: input, shape index: {}]   ;;  %s324_s3 = inlined_call_operand.vmem [shape: f32[32,32], index: 3, kind: input, shape index: {}]   ;;  %s325_s5 = inlined_call_operand.vmem [shape: f32[1,32], index: 5, kind: input, shape index: {}]   ;;  %s326_s6 = inlined_call_operand.<no memory space> [shape: f32[1,1], index: 6, kind: input, shape index: {}]   ;;  %s327_s7 = inlined_call_operand.vmem [shape: f32[1,128], index: 7, kind: output, shape index: {}]  }
   0x1   :  { %211 = vset.pattern.permute.xlu1 %v214_v0  ;;  %210 = vset.pattern.permute.xlu0 %v214_v0  ;;  %v62_v1 = vld [vmem:[%s320_s2 + $0x18] sm:$0xff]  ;;  %v61_v3 = vld [vmem:[%s320_s2 + $0x10] sm:$0xff]  ;;  %v28_v5 = vld [vmem:[%s321_s1 + $0x8] sm:$0xff]  ;;  %v167_v55 = vstv %s326_s6 }
   0x2   :  { %v30_v2 = vld [vmem:[%s321_s1 + $0x18] sm:$0xff]  ;;  %80 = vperm.xlu1 %211, %v62_v1   ;;  %212 = vset.pattern.permute.xlu2 %v214_v0  ;;  %v29_v4 = vld [vmem:[%s321_s1 + $0x10] sm:$0xff]  ;;  %v27_v6 = vld [vmem:[%s321_s1] sm:$0xff] }
   0x3   :  { %49 = vperm.xlu0 %210, %v30_v2   ;;  %75 = vperm.xlu2 %212, %v61_v3   ;;  %v60_v7 = vld [vmem:[%s320_s2 + $0x8] sm:$0xff]  ;;  %v59_v8 = vld [vmem:[%s320_s2] sm:$0xff]  ;;  %v98_v9 = vld [vmem:[%s323_s4 + $0x18] sm:$0xff] }
   0x4   :  { %v97_v10 = vld [vmem:[%s323_s4 + $0x10] sm:$0xff]  ;;  %v96_v11 = vld [vmem:[%s323_s4 + $0x8] sm:$0xff]  ;;  %v95_v12 = vld [vmem:[%s323_s4] sm:$0xff] }
   0x5   :  { %v213_v13 = vld [vmem:[%s322_s0] ss:$0 sm:$0xff]  ;;  %v92_v35 = vld [vmem:[%s324_s3 + $0x8] sm:$0xff]  ;;  %v93_v36 = vld [vmem:[%s324_s3 + $0x10] sm:$0xff] }
   0x6   :  { %v91_v34 = vld [vmem:[%s324_s3] sm:$0xff]  ;;  %v94_v37 = vld [vmem:[%s324_s3 + $0x18] sm:$0xff] }
   0x7   :  { %v165_v54 = vld [vmem:[%s325_s5] sm:$0x1] }
   0xa   :  { %39 = vperm.xlu1 %211, %v28_v5  }
   0xb   :  { %44 = vperm.xlu0 %210, %v29_v4   ;;  %34 = vperm.xlu2 %212, %v27_v6  }
  0x12   :  { %65 = vperm.xlu1 %211, %v59_v8  }
  0x13   :  { %70 = vperm.xlu0 %210, %v60_v7   ;;  %116 = vperm.xlu2 %212, %v98_v9  }
  0x1a   :  { %106 = vperm.xlu1 %211, %v96_v11  }
  0x1b   :  { %111 = vperm.xlu0 %210, %v97_v10   ;;  %101 = vperm.xlu2 %212, %v95_v12  }
  0x5d   :  { %v76_v18 = vpop.permute.xlu2 %75 }
  0x65   :  { %v35_v25 = vpop.permute.xlu2 %34 }
  0x66   :  { %v55_v26 = vmul.f32 %v213_v13, %v35_v25 }
  0x6d   :  { %v117_v39 = vpop.permute.xlu2 %116 }
  0x74   :  { %v81_v14 = vpop.permute.xlu1 %80 }
  0x75   :  { %v50_v15 = vpop.permute.xlu0 %49  ;;  %v102_v49 = vpop.permute.xlu2 %101 }
  0x76   :  { %v58_v16 = vmul.f32 %v213_v13, %v50_v15 }
  0x78   :  { %v86_v17 = vadd.f32 %v81_v14, %v58_v16 }
  0x7a   :  { %v90_v19 = vmax.f32 %v86_v17, 0.0 }
  0x7c   :  { %144 = vmatpush.msra.mxu0 %v90_v19  ;;  %201 = vmatpush.msra.mxu2 %v90_v19  ;;  %v40_v21 = vpop.permute.xlu1 %39 }
  0x7d   :  { %202 = vmatpush.msra.mxu3 %v90_v19  ;;  %v45_v20 = vpop.permute.xlu0 %44  ;;  %v56_v27 = vmul.f32 %v213_v13, %v40_v21 }
  0x7e   :  { %v57_v22 = vmul.f32 %v213_v13, %v45_v20 }
  0x80   :  { %v85_v23 = vadd.f32 %v76_v18, %v57_v22 }
  0x82   :  { %v89_v24 = vmax.f32 %v85_v23, 0.0 }
  0x84   :  { %145 = vmatpush.msra.mxu0 %v89_v24  ;;  %203 = vmatpush.msra.mxu2 %v89_v24  ;;  %v66_v29 = vpop.permute.xlu1 %65 }
  0x85   :  { %204 = vmatpush.msra.mxu3 %v89_v24  ;;  %v71_v28 = vpop.permute.xlu0 %70  ;;  %v83_v31 = vadd.f32 %v66_v29, %v55_v26 }
  0x86   :  { %v84_v30 = vadd.f32 %v71_v28, %v56_v27 }
  0x87   :  { %v87_v33 = vmax.f32 %v83_v31, 0.0 }
  0x88   :  { %v88_v32 = vmax.f32 %v84_v30, 0.0 }
  0x8a   :  { %146 = vmatpush.msra.mxu0 %v88_v32  ;;  %205 = vmatpush.msra.mxu2 %v88_v32 }
  0x8b   :  { %206 = vmatpush.msra.mxu3 %v88_v32 }
  0x8c   :  { %147 = vmatpush.msra.mxu0 %v87_v33  ;;  %207 = vmatpush.msra.mxu2 %v87_v33  ;;  %v107_v45 = vpop.permute.xlu1 %106 }
  0x8d   :  { %208 = vmatpush.msra.mxu3 %v87_v33  ;;  %196 = vmatmul.msk.f32.vlgmr.msra.gmra.mxu0 %vm119_vm0, %v91_v34  ;;  %v112_v40 = vpop.permute.xlu0 %111 }
  0x8e   :  { %197 = vmatmul.msk.f32.vlgmr.msra.gmra.mxu2 %vm119_vm0, %v92_v35  ;;  %198 = vmatmul.msk.f32.vlgmr.msra.gmra.mxu3 %vm119_vm0, %v93_v36 }
  0x96   :  { %199 = vmatmul.msk.f32.gmra.mxu3 %vm119_vm0, %v94_v37 }
 0x10a   :  { %v149_v46 = vpop.f32.mrf.mxu0 }
 0x10b   :  { %v150_v50 = vadd.f32 %v149_v46, %v102_v49 }
 0x10d   :  { %v161_v53 = vmax.f32 %v150_v50, 0.0 }
 0x111   :  { %v155_v38 = vpop.f32.mrf.mxu3  ;;  %v152_v41 = vpop.f32.mrf.mxu2 }
 0x112   :  { %v156_v43 = vadd.f32 %v155_v38, %v112_v40  ;;  %v153_v47 = vadd.f32 %v152_v41, %v107_v45 }
 0x114   :  { %v163_v51 = vmax.f32 %v156_v43, 0.0  ;;  %v162_v52 = vmax.f32 %v153_v47, 0.0 }
 0x119   :  { %v158_v42 = vpop.f32.mrf.mxu3 }
 0x11a   :  { %v159_v44 = vadd.f32 %v158_v42, %v117_v39 }
 0x11c   :  { %v164_v48 = vmax.f32 %v159_v44, 0.0 }
 0x11e   :  { %183 = vmatpush.msra.mxu1 %v164_v48 }
 0x120   :  { %184 = vmatpush.msra.mxu1 %v163_v51 }
 0x122   :  { %185 = vmatpush.msra.mxu1 %v162_v52 }
 0x124   :  { %186 = vmatpush.msra.mxu1 %v161_v53 }
 0x125   :  { %200 = vmatmul.msk.f32.vlgmr.msra.gmra.mxu1 %vm119_vm0, %v165_v54 }
 0x1a2   :  { %v188_v56 = vpop.f32.mrf.mxu1 }
 0x1a3   :  { %v189_v57 = vadd.f32 %v188_v56, %v167_v55 }
 0x1a5   :  { %191 = vst [vmem:[%s327_s7] sm:$0x1] %v189_v57 }

</bundles_post_ra>
